<compile_context>
chip_gen: v7x
topology: tpu7x:2x2x1
jax: 0.10.0
libtpu: 0.0.40
codegen_flags: <defaults>
</compile_context>

<pallas_src>
import jax
import jax.numpy as jnp
from jax.experimental import pallas as pl
from jax.experimental.pallas import tpu as pltpu

N_PAD = 128  # lane-dense padded width for the fc3 matmul (true out_features = 2)


def _round_up(n, m):
    return ((n + m - 1) // m) * m


def mlp_kernel(x_ref, w1_ref, b1_ref, w2_ref, b2_ref, w3_ref, b3_ref, o_ref):
    # One batch tile per grid step; all weights resident in VMEM across steps.
    x = x_ref[...]                                                    # [TB, 8] f32

    # fc1: bf16 MXU matmul, f32 accumulate; bias/ReLU in f32 (v5e-safe VPU path).
    h1 = jnp.dot(x.astype(jnp.bfloat16), w1_ref[...],
                 preferred_element_type=jnp.float32)                  # [TB, 512]
    h1 = jnp.maximum(h1 + b1_ref[...], 0.0)
    # Dropout(0.2): identity in eval/inference mode.

    # fc2
    h2 = jnp.dot(h1.astype(jnp.bfloat16), w2_ref[...],
                 preferred_element_type=jnp.float32)                  # [TB, 512]
    h2 = jnp.maximum(h2 + b2_ref[...], 0.0)
    # Dropout(0.2): identity in eval/inference mode.

    # fc3: keep the matmul lane-dense (N padded to 128), store only the real columns.
    logits = jnp.dot(h2.astype(jnp.bfloat16), w3_ref[...],
                     preferred_element_type=jnp.float32)               # [TB, 128]
    n_out = o_ref.shape[-1]                                            # 2
    o_ref[...] = (logits[:, :n_out] + b3_ref[...]).astype(o_ref.dtype)


def prepare_params(params):
    """One-time parameter preparation (hoisted out of the per-call forward):
    bf16 weight cast (MXU-native, halves weight DMA) + lane-dense padding of fc3
    weights to 128 columns. Bias b3 stays at its true (1, 2) shape."""
    w1, b1, w2, b2, w3, b3 = (params[k] for k in ("w1", "b1", "w2", "b2", "w3", "b3"))
    out_features = w3.shape[1]  # 2
    w3p = jnp.zeros((w3.shape[0], N_PAD), jnp.bfloat16).at[:, :out_features].set(
        w3.astype(jnp.bfloat16))
    return dict(
        w1=w1.astype(jnp.bfloat16), b1=b1.astype(jnp.float32),
        w2=w2.astype(jnp.bfloat16), b2=b2.astype(jnp.float32),
        w3=w3p, b3=b3.astype(jnp.float32),
    )


def _choose_tile_b(B, tile_b):
    """Batch tile: multiple of 8 (sublane rule), and for large B capped so the grid
    has >= 2 steps aligned to the 256-row MXU M-granule (v7x megacore sharding)."""
    tile_b = max(8, _round_up(tile_b, 8))
    b8 = _round_up(B, 8)
    two_steps = _round_up(pl.cdiv(b8, 2), 256)
    return min(tile_b, two_steps, b8)


def net_forward(x, prep, tile_b=1024):
    """x: [B, 8] float32. prep: output of prepare_params (bf16 weights, padded w3)."""
    w1, b1, w2, b2, w3p, b3 = (prep[k] for k in ("w1", "b1", "w2", "b2", "w3", "b3"))
    B, F_in = x.shape
    out_features = b3.shape[1]  # 2

    tb = _choose_tile_b(B, tile_b)
    grid = (pl.cdiv(B, tb),)  # partial edge block handled by Pallas (masked output store)

    # Weights/biases: constant block index -> DMA'd once, resident across grid steps.
    resident = lambda a: pl.BlockSpec(a.shape, lambda i: (0,) * a.ndim)

    out = pl.pallas_call(
        mlp_kernel,
        out_shape=jax.ShapeDtypeStruct((B, out_features), jnp.float32),
        grid_spec=pl.GridSpec(
            grid=grid,
            in_specs=[
                pl.BlockSpec((tb, F_in), lambda i: (i, 0)),   # x tile, pipelined
                resident(w1), resident(b1),
                resident(w2), resident(b2),
                resident(w3p), resident(b3),
            ],
            # Narrow (tb, 2) output block: 64x less writeback than padded f32x128.
            out_specs=pl.BlockSpec((tb, out_features), lambda i: (i, 0)),
        ),
        compiler_params=pltpu.CompilerParams(
            dimension_semantics=("parallel",),  # shard batch tiles across TCs (v7x)
        ),
    )(x, w1, b1, w2, b2, w3p, b3)

    return out


def init_params(key):
    """Deterministic parameter init matching nn.Linear shapes (stored as [in, out])."""
    k1, k2, k3, k4, k5, k6 = jax.random.split(key, 6)

    def linear(kw, kb, fan_in, fan_out):
        bound = 1.0 / jnp.sqrt(jnp.float32(fan_in))
        w = jax.random.uniform(kw, (fan_in, fan_out), jnp.float32, -bound, bound)
        b = jax.random.uniform(kb, (1, fan_out), jnp.float32, -bound, bound)
        return w, b

    w1, b1 = linear(k1, k2, 8, 512)
    w2, b2 = linear(k3, k4, 512, 512)
    w3, b3 = linear(k5, k6, 512, 2)
    return dict(w1=w1, b1=b1, w2=w2, b2=b2, w3=w3, b3=b3)


def reference_forward(x, p):
    h1 = jnp.maximum(x @ p["w1"] + p["b1"], 0.0)
    h2 = jnp.maximum(h1 @ p["w2"] + p["b2"], 0.0)
    return h2 @ p["w3"] + p["b3"]


if __name__ == "__main__":
    key = jax.random.PRNGKey(0)
    kx, kx2, kx3, kp = jax.random.split(key, 4)
    params = init_params(kp)
    prep = prepare_params(params)  # one-time weight prep, outside the per-call forward

    # Small, module-consistent shape: Titanic-style 8-feature input, batch=8.
    batch = 8
    x = jax.random.normal(kx, (batch, 8), jnp.float32)
    out = jax.block_until_ready(net_forward(x, prep))
    ref = reference_forward(x, params)
    assert out.shape == (batch, 2)
    # bf16 weights/activations with f32 accumulation: loosen tolerance vs f32 reference.
    assert jnp.allclose(out, ref, atol=5e-2, rtol=5e-2), "mismatch vs JAX reference (B=8)"

    # Exercise multi-step grid + partial edge block (200 = 3*64 + 8, masked edge store).
    batch2 = 200
    x2 = jax.random.normal(kx2, (batch2, 8), jnp.float32)
    out2 = jax.block_until_ready(net_forward(x2, prep, tile_b=64))
    ref2 = reference_forward(x2, params)
    assert out2.shape == (batch2, 2)
    assert jnp.allclose(out2, ref2, atol=5e-2, rtol=5e-2), "mismatch vs JAX reference (B=200)"

    # Exercise the >=2-step auto-split (B=600 -> tb=512 -> grid of 2, partial last tile).
    batch3 = 600
    x3 = jax.random.normal(kx3, (batch3, 8), jnp.float32)
    out3 = jax.block_until_ready(net_forward(x3, prep))
    ref3 = reference_forward(x3, params)
    assert out3.shape == (batch3, 2)
    assert jnp.allclose(out3, ref3, atol=5e-2, rtol=5e-2), "mismatch vs JAX reference (B=600)"

    # TODO(synk): training-mode dropout (p=0.2) would need pltpu.prng_seed/prng_random_bits;
    # eval-mode forward (as specified) treats it as identity.
    print("KERNEL_OK")
</pallas_src>

<mosaic_0001>
module attributes {stable_mosaic.version = 11 : i64} {
  func.func @mlp_kernel(%arg0: i32, %arg1: memref<8x8xf32, #tpu.memory_space<vmem>>, %arg2: memref<8x512xbf16, #tpu.memory_space<vmem>>, %arg3: memref<1x512xf32, #tpu.memory_space<vmem>>, %arg4: memref<512x512xbf16, #tpu.memory_space<vmem>>, %arg5: memref<1x512xf32, #tpu.memory_space<vmem>>, %arg6: memref<512x128xbf16, #tpu.memory_space<vmem>>, %arg7: memref<1x2xf32, #tpu.memory_space<vmem>>, %arg8: memref<8x2xf32, #tpu.memory_space<vmem>>) attributes {dimension_semantics = [#tpu.dimension_semantics<parallel>], iteration_bounds = array<i64: 1>, scalar_prefetch = 0 : i64, scratch_operands = 0 : i64, tpu.core_type = #tpu.core_type<tc>, window_params = [{transform_indices = @transform_0, window_bounds = array<i64: 8, 8>}, {pipeline_mode = #tpu.pipeline_mode<synchronous>, transform_indices = @transform_1, window_bounds = array<i64: 8, 512>}, {pipeline_mode = #tpu.pipeline_mode<synchronous>, transform_indices = @transform_2, window_bounds = array<i64: 1, 512>}, {pipeline_mode = #tpu.pipeline_mode<synchronous>, transform_indices = @transform_3, window_bounds = array<i64: 512, 512>}, {pipeline_mode = #tpu.pipeline_mode<synchronous>, transform_indices = @transform_4, window_bounds = array<i64: 1, 512>}, {pipeline_mode = #tpu.pipeline_mode<synchronous>, transform_indices = @transform_5, window_bounds = array<i64: 512, 128>}, {pipeline_mode = #tpu.pipeline_mode<synchronous>, transform_indices = @transform_6, window_bounds = array<i64: 1, 2>}, {transform_indices = @transform_7, window_bounds = array<i64: 8, 2>}]} {
    %c0 = arith.constant 0 : index
    %c0_0 = arith.constant 0 : index
    %0 = vector.load %arg1[%c0, %c0_0] : memref<8x8xf32, #tpu.memory_space<vmem>>, vector<8x8xf32>
    %1 = arith.truncf %0 : vector<8x8xf32> to vector<8x8xbf16>
    %c0_1 = arith.constant 0 : index
    %c0_2 = arith.constant 0 : index
    %2 = vector.load %arg2[%c0_1, %c0_2] : memref<8x512xbf16, #tpu.memory_space<vmem>>, vector<8x512xbf16>
    %cst = arith.constant dense<0.000000e+00> : vector<8x512xf32>
    %3 = tpu.matmul %1, %2, %cst {dimension_numbers = #tpu.dot_dimension_numbers<[1], [0], [0], [1], [0, 0, 1, 1], [], []>} : vector<8x8xbf16>, vector<8x512xbf16>, vector<8x512xf32> -> vector<8x512xf32>
    %c0_3 = arith.constant 0 : index
    %c0_4 = arith.constant 0 : index
    %4 = vector.load %arg3[%c0_3, %c0_4] : memref<1x512xf32, #tpu.memory_space<vmem>>, vector<1x512xf32>
    %5 = vector.broadcast %4 : vector<1x512xf32> to vector<8x512xf32>
    %6 = arith.addf %3, %5 : vector<8x512xf32>
    %cst_5 = arith.constant 0.000000e+00 : f32
    %7 = vector.broadcast %cst_5 : f32 to vector<8x512xf32>
    %8 = arith.maximumf %6, %7 : vector<8x512xf32>
    %9 = arith.truncf %8 : vector<8x512xf32> to vector<8x512xbf16>
    %c0_6 = arith.constant 0 : index
    %c0_7 = arith.constant 0 : index
    %10 = vector.load %arg4[%c0_6, %c0_7] : memref<512x512xbf16, #tpu.memory_space<vmem>>, vector<512x512xbf16>
    %cst_8 = arith.constant dense<0.000000e+00> : vector<8x512xf32>
    %11 = tpu.matmul %9, %10, %cst_8 {dimension_numbers = #tpu.dot_dimension_numbers<[1], [0], [0], [1], [0, 0, 1, 1], [], []>} : vector<8x512xbf16>, vector<512x512xbf16>, vector<8x512xf32> -> vector<8x512xf32>
    %c0_9 = arith.constant 0 : index
    %c0_10 = arith.constant 0 : index
    %12 = vector.load %arg5[%c0_9, %c0_10] : memref<1x512xf32, #tpu.memory_space<vmem>>, vector<1x512xf32>
    %13 = vector.broadcast %12 : vector<1x512xf32> to vector<8x512xf32>
    %14 = arith.addf %11, %13 : vector<8x512xf32>
    %cst_11 = arith.constant 0.000000e+00 : f32
    %15 = vector.broadcast %cst_11 : f32 to vector<8x512xf32>
    %16 = arith.maximumf %14, %15 : vector<8x512xf32>
    %17 = arith.truncf %16 : vector<8x512xf32> to vector<8x512xbf16>
    %c0_12 = arith.constant 0 : index
    %c0_13 = arith.constant 0 : index
    %18 = vector.load %arg6[%c0_12, %c0_13] : memref<512x128xbf16, #tpu.memory_space<vmem>>, vector<512x128xbf16>
    %cst_14 = arith.constant dense<0.000000e+00> : vector<8x128xf32>
    %19 = tpu.matmul %17, %18, %cst_14 {dimension_numbers = #tpu.dot_dimension_numbers<[1], [0], [0], [1], [0, 0, 1, 1], [], []>} : vector<8x512xbf16>, vector<512x128xbf16>, vector<8x128xf32> -> vector<8x128xf32>
    %20 = vector.extract_strided_slice %19 {offsets = [0, 0], sizes = [8, 2], strides = [1, 1]} : vector<8x128xf32> to vector<8x2xf32>
    %c0_15 = arith.constant 0 : index
    %c0_16 = arith.constant 0 : index
    %21 = vector.load %arg7[%c0_15, %c0_16] : memref<1x2xf32, #tpu.memory_space<vmem>>, vector<1x2xf32>
    %22 = vector.broadcast %21 : vector<1x2xf32> to vector<8x2xf32>
    %23 = arith.addf %20, %22 : vector<8x2xf32>
    %c0_17 = arith.constant 0 : index
    %c0_18 = arith.constant 0 : index
    %24 = vector.load %arg8[%c0_17, %c0_18] : memref<8x2xf32, #tpu.memory_space<vmem>>, vector<8x2xf32>
    tpu.vector_store %arg8[%c0_17, %c0_18], %23 {strides = array<i32>} : memref<8x2xf32, #tpu.memory_space<vmem>>, vector<8x2xf32>,
    return
  }
  func.func @transform_0(%arg0: i32) -> (i32, i32) {
    %c0_i32 = arith.constant 0 : i32
    %c0_i32_0 = arith.constant 0 : i32
    return %arg0, %c0_i32 : i32, i32
  }
  func.func @transform_1(%arg0: i32) -> (i32, i32) {
    %c0_i32 = arith.constant 0 : i32
    %c0_i32_0 = arith.constant 0 : i32
    %c0_i32_1 = arith.constant 0 : i32
    return %c0_i32, %c0_i32_0 : i32, i32
  }
  func.func @transform_2(%arg0: i32) -> (i32, i32) {
    %c0_i32 = arith.constant 0 : i32
    %c0_i32_0 = arith.constant 0 : i32
    %c0_i32_1 = arith.constant 0 : i32
    return %c0_i32, %c0_i32_0 : i32, i32
  }
  func.func @transform_3(%arg0: i32) -> (i32, i32) {
    %c0_i32 = arith.constant 0 : i32
    %c0_i32_0 = arith.constant 0 : i32
    %c0_i32_1 = arith.constant 0 : i32
    return %c0_i32, %c0_i32_0 : i32, i32
  }
  func.func @transform_4(%arg0: i32) -> (i32, i32) {
    %c0_i32 = arith.constant 0 : i32
    %c0_i32_0 = arith.constant 0 : i32
    %c0_i32_1 = arith.constant 0 : i32
    return %c0_i32, %c0_i32_0 : i32, i32
  }
  func.func @transform_5(%arg0: i32) -> (i32, i32) {
    %c0_i32 = arith.constant 0 : i32
    %c0_i32_0 = arith.constant 0 : i32
    %c0_i32_1 = arith.constant 0 : i32
    return %c0_i32, %c0_i32_0 : i32, i32
  }
  func.func @transform_6(%arg0: i32) -> (i32, i32) {
    %c0_i32 = arith.constant 0 : i32
    %c0_i32_0 = arith.constant 0 : i32
    %c0_i32_1 = arith.constant 0 : i32
    return %c0_i32, %c0_i32_0 : i32, i32
  }
  func.func @transform_7(%arg0: i32) -> (i32, i32) {
    %c0_i32 = arith.constant 0 : i32
    %c0_i32_0 = arith.constant 0 : i32
    return %arg0, %c0_i32 : i32, i32
  }
}

</mosaic_0001>

<bundles_post_ra>
// kernel: tpu_custom_call.1
= control target key start
LH: loop header
LB: loop body
LE: loop exit
PB: predicated region body
PF: predicated region fallthrough
CT: control target
= control target key end

     0   :  { %12 = vsyncpa [#allocation3], 0  ;;  %s2232_s0 = inlined_call_operand.hbm [shape: f32[8,8], index: 0, kind: input, shape index: {}]   ;;  %s2233_s1 = inlined_call_operand.hbm [shape: bf16[8,512], index: 1, kind: input, shape index: {}]   ;;  %s2234_s2 = inlined_call_operand.vmem [shape: f32[1,512], index: 2, kind: input, shape index: {}]   ;;  %s2235_s3 = inlined_call_operand.hbm [shape: bf16[512,512], index: 3, kind: input, shape index: {}]   ;;  %s2236_s4 = inlined_call_operand.vmem [shape: f32[1,512], index: 4, kind: input, shape index: {}]   ;;  %s2237_s5 = inlined_call_operand.hbm [shape: bf16[512,128], index: 5, kind: input, shape index: {}]   ;;  %s2238_s6 = inlined_call_operand.vmem [shape: f32[1,2], index: 6, kind: input, shape index: {}]   ;;  %s2239_s7 = inlined_call_operand.vmem [shape: f32[8,2], index: 7, kind: output, shape index: {}]  }
   0x1   :  { %13 = vsyncpa [#allocation5], 0 }
   0x2   :  { %14 = vsyncpa [#allocation8], 0  ;;  %s2092_s24 = smov [#allocation4]   ;;  %s2093_s26 = smov [#allocation2]  }
   0x3   :  { %s31_s25 = sshll.u32 %s2092_s24, 4  ;;  %s21_s27 = sshll.u32 %s2093_s26, 4  ;;  %s32_s25 = int_to_ptr.vmem [resolvable:$true] %s31_s25  ;;  %s22_s27 = int_to_ptr.vmem [resolvable:$true] %s21_s27 }
   0x4   :  { %s1998_s30 = scalar_lea.hbm %s2233_s1, 256 }
   0x5   :  { %p1999_p0 = scmp.ne.s32.totalorder %s2233_s1, %s1998_s30  ;;  %p2002_p1 = scmp.lt.u32.totalorder %s1998_s30, %s2233_s1 }
   0x7   :  { %p2004_p2 = pnand %p2002_p1, %p1999_p0 }
   0x9   :  { %2007 = shalt.err (!%p2004_p2)
}
   0xa   :  { %s2008_s12 = scalar_lea.vmem %s32_s25, 256  ;;  %p2013_p4 = scmp.lt.s32.totalorder %s32_s25, %s32_s25 }
   0xb   :  { %p2009_p3 = scmp.ne.s32.totalorder %s32_s25, %s2008_s12  ;;  %p2014_p5 = scmp.lt.s32.totalorder %s2008_s12, %s2008_s12 }
   0xd   :  { %p2015_p6 = por %p2014_p5, %p2013_p4 }
   0xf   :  { %p2016_p7 = pnand %p2015_p6, %p2009_p3 }
  0x11   :  { %2019 = shalt.err (!%p2016_p7)
}
  0x12   :  { %34 = dma.hbm_to_vmem [thread:$0]  %s2233_s1, 256, %s32_s25, [#allocation5]  }
  0x13   :  { %s2020_s17 = scalar_lea.hbm %s2232_s0, 128 }
  0x14   :  { %p2021_p8 = scmp.ne.s32.totalorder %s2232_s0, %s2020_s17  ;;  %p2024_p9 = scmp.lt.u32.totalorder %s2020_s17, %s2232_s0 }
  0x16   :  { %p2026_p10 = pnand %p2024_p9, %p2021_p8 }
  0x18   :  { %2029 = shalt.err (!%p2026_p10)
}
  0x19   :  { %s2030_s22 = scalar_lea.vmem %s22_s27, 128  ;;  %p2035_p12 = scmp.lt.s32.totalorder %s22_s27, %s22_s27 }
  0x1a   :  { %p2031_p11 = scmp.ne.s32.totalorder %s22_s27, %s2030_s22  ;;  %p2036_p13 = scmp.lt.s32.totalorder %s2030_s22, %s2030_s22 }
  0x1c   :  { %p2037_p0 = por %p2036_p13, %p2035_p12 }
  0x1e   :  { %p2038_p1 = pnand %p2037_p0, %p2031_p11 }
  0x20   :  { %2041 = shalt.err (!%p2038_p1)
}
  0x21   :  { %24 = dma.hbm_to_vmem [thread:$0]  %s2232_s0, 128, %s22_s27, [#allocation3]  }
  0x22   :  { %s2094_s24 = smov [#allocation6]   ;;  %s2042_s29 = scalar_lea.hbm %s2235_s3, 16384 }
  0x23   :  { %s42_s25 = sshll.u32 %s2094_s24, 4  ;;  %p2043_p2 = scmp.ne.s32.totalorder %s2235_s3, %s2042_s29  ;;  %s43_s25 = int_to_ptr.vmem [resolvable:$true] %s42_s25 }
  0x24   :  { %p2046_p3 = scmp.lt.u32.totalorder %s2042_s29, %s2235_s3 }
  0x26   :  { %p2048_p4 = pnand %p2046_p3, %p2043_p2 }
  0x28   :  { %2051 = shalt.err (!%p2048_p4)
}
  0x29   :  { %s2052_s11 = scalar_lea.vmem %s43_s25, 16384  ;;  %p2057_p6 = scmp.lt.s32.totalorder %s43_s25, %s43_s25 }
  0x2a   :  { %p2053_p5 = scmp.ne.s32.totalorder %s43_s25, %s2052_s11  ;;  %p2058_p7 = scmp.lt.s32.totalorder %s2052_s11, %s2052_s11 }
  0x2c   :  { %p2059_p8 = por %p2058_p7, %p2057_p6 }
  0x2e   :  { %p2060_p9 = pnand %p2059_p8, %p2053_p5 }
  0x30   :  { %2063 = shalt.err (!%p2060_p9)
}
  0x31   :  { %s2095_s0 = smov 256   ;;  %s2096_s27 = smov 16  }
  0x32   :  { %48 = dma.hbm_to_vmem [thread:$0]  %s2235_s3, 16384, %s43_s25, [#allocation5], %s2095_s0, %s2095_s0, %s2096_s27  }
  0x33   :  { %s2097_s14 = smov [#allocation7]   ;;  %s2064_s18 = scalar_lea.hbm %s2237_s5, 4096 }
  0x34   :  { %s56_s15 = sshll.u32 %s2097_s14, 4  ;;  %p2065_p10 = scmp.ne.s32.totalorder %s2237_s5, %s2064_s18  ;;  %s57_s15 = int_to_ptr.vmem [resolvable:$true] %s56_s15 }
  0x35   :  { %p2068_p11 = scmp.lt.u32.totalorder %s2064_s18, %s2237_s5 }
  0x37   :  { %p2070_p12 = pnand %p2068_p11, %p2065_p10 }
  0x39   :  { %2073 = shalt.err (!%p2070_p12)
}
  0x3a   :  { %s2074_s1 = scalar_lea.vmem %s57_s15, 4096  ;;  %p2079_p0 = scmp.lt.s32.totalorder %s57_s15, %s57_s15 }
  0x3b   :  { %p2075_p13 = scmp.ne.s32.totalorder %s57_s15, %s2074_s1  ;;  %p2080_p1 = scmp.lt.s32.totalorder %s2074_s1, %s2074_s1 }
  0x3d   :  { %p2081_p2 = por %p2080_p1, %p2079_p0 }
  0x3f   :  { %p2082_p3 = pnand %p2081_p2, %p2075_p13 }
  0x41   :  { %2085 = shalt.err (!%p2082_p3)
}
  0x42   :  { %s2098_s3 = smov 64   ;;  %s2099_s23 = smov 4  }
  0x43   :  { %62 = dma.hbm_to_vmem [thread:$0]  %s2237_s5, 4096, %s57_s15, [#allocation8], %s2098_s3, %s2098_s3, %s2099_s23  }
  0x44   :  { %2086 = dma.done.wait [#allocation3], 128  }
  0x45   :  { %2087 = vsyncadd [#allocation3], 4294967168 }
  0x46   :  { %2088 = dma.done.wait [#allocation5], 16640  }
  0x47   :  { %2089 = vsyncadd [#allocation5], 4294950656 }
  0x48   :  { %2090 = dma.done.wait [#allocation8], 4096  }
  0x49   :  { %2091 = vsyncadd [#allocation8], 4294963200  ;;  %v2100_v0 = vmov 0   ;;  %v80_v1 = vld [vmem:[#allocation4] sm:$0xff]  ;;  %vm118_vm0 = vcmask 1043456   ;;  %v78_v2 = vld [vmem:[#allocation2] sm:$0xff] }
  0x4a   :  { %163 = vmatprep.mubr.bf16.mxu0 %v2100_v0  ;;  %204 = vmatprep.mubr.bf16.mxu1 %v2100_v0  ;;  %v81_v3 = vld [vmem:[#allocation4 + $0x8] sm:$0xff]  ;;  %v1537_v4 = vcombine.high %v80_v1, %v80_v1  ;;  %v1536_v5 = vcombine.low %v80_v1, %v80_v1  ;;  %v1776_v8 = vld [vmem:[#allocation6 + $0x4] ss:$16 sps:$4 sm:$0xff]   ;;  %v79_v10 = vpack.c.bf16 %v78_v2, %v78_v2  ;;  %vm114_vm1 = vcmask 64512   ;;  %v1774_v13 = vld [vmem:[#allocation6] ss:$16 sps:$4 sm:$0xff]  }
  0x4b   :  { %v1539_v6 = vcombine.high %v81_v3, %v81_v3  ;;  %v1538_v7 = vcombine.low %v81_v3, %v81_v3  ;;  %v1779_v11 = vld [vmem:[#allocation6 + $0xc] ss:$16 sps:$4 sm:$0xff]   ;;  %v1777_v14 = vld [vmem:[#allocation6 + $0x8] ss:$16 sps:$4 sm:$0xff]   ;;  %v1782_v15 = vld [vmem:[#allocation6 + $0x24] ss:$16 sps:$4 sm:$0xff]  }
  0x4c   :  { %1540 = vmatprep.subr.msk.bf16.mxu0 %vm118_vm0, %v1537_v4  ;;  %v120_v9 = vsel %vm118_vm0, %v1536_v5, 0  ;;  %v1785_v16 = vld [vmem:[#allocation6 + $0x2c] ss:$16 sps:$4 sm:$0xff]   ;;  %v1780_v17 = vld [vmem:[#allocation6 + $0x20] ss:$16 sps:$4 sm:$0xff]   ;;  %vm1527_vm2 = vcmask 15360  }
  0x4d   :  { %1542 = vmatprep.subr.msk.bf16.mxu1 %vm118_vm0, %v1539_v6  ;;  %132 = vmatpush1.bf16.msra.mxu0 %v120_v9  ;;  %v126_v12 = vsel %vm118_vm0, %v1538_v7, 0  ;;  %v1783_v18 = vld [vmem:[#allocation6 + $0x28] ss:$16 sps:$4 sm:$0xff]   ;;  %v1788_v19 = vld [vmem:[#allocation6 + $0x44] ss:$16 sps:$4 sm:$0xff]  }
  0x4e   :  { %173 = vmatpush1.bf16.msra.mxu1 %v126_v12  ;;  %1011 = vmatprep.subr.bf16.mxu0 %v1776_v8  ;;  %v1791_v20 = vld [vmem:[#allocation6 + $0x4c] ss:$16 sps:$4 sm:$0xff]   ;;  %v1786_v21 = vld [vmem:[#allocation6 + $0x40] ss:$16 sps:$4 sm:$0xff]   ;;  %v1789_v22 = vld [vmem:[#allocation6 + $0x48] ss:$16 sps:$4 sm:$0xff]  }
  0x4f   :  { %1093 = vmatprep.subr.bf16.mxu1 %v1779_v11  ;;  %v1794_v23 = vld [vmem:[#allocation6 + $0x64] ss:$16 sps:$4 sm:$0xff]   ;;  %v1797_v24 = vld [vmem:[#allocation6 + $0x6c] ss:$16 sps:$4 sm:$0xff]   ;;  %v1792_v25 = vld [vmem:[#allocation6 + $0x60] ss:$16 sps:$4 sm:$0xff]  }
  0x50   :  { %1541 = vmatmul.mubr.msk.bf16.vlgmr.msra.gmra.mrb[0].mxu0 %vm114_vm1, %v79_v10  ;;  %v1795_v26 = vld [vmem:[#allocation6 + $0x68] ss:$16 sps:$4 sm:$0xff]   ;;  %v1800_v27 = vld [vmem:[#allocation6 + $0x84] ss:$16 sps:$4 sm:$0xff]   ;;  %v1803_v28 = vld [vmem:[#allocation6 + $0x8c] ss:$16 sps:$4 sm:$0xff]  }
  0x51   :  { %1543 = vmatmul.mubr.msk.bf16.vlgmr.msra.gmra.mrb[0].mxu1 %vm114_vm1, %v79_v10  ;;  %1012 = vmatpush1.bf16.msra.mxu0 %v1774_v13  ;;  %v1798_v29 = vld [vmem:[#allocation6 + $0x80] ss:$16 sps:$4 sm:$0xff]   ;;  %v1801_v30 = vld [vmem:[#allocation6 + $0x88] ss:$16 sps:$4 sm:$0xff]   ;;  %v1806_v31 = vld [vmem:[#allocation6 + $0xa4] ss:$16 sps:$4 sm:$0xff]   ;;  %v84_v13 = vlaneseq }
  0x52   :  { %1094 = vmatpush1.bf16.msra.mxu1 %v1777_v14  ;;  %1013 = vmatprep.subr.bf16.mxu0 %v1782_v15  ;;  %v1809_v32 = vld [vmem:[#allocation6 + $0xac] ss:$16 sps:$4 sm:$0xff]   ;;  %v1804_v33 = vld [vmem:[#allocation6 + $0xa0] ss:$16 sps:$4 sm:$0xff]   ;;  %v1807_v34 = vld [vmem:[#allocation6 + $0xa8] ss:$16 sps:$4 sm:$0xff]  }
  0x53   :  { %1095 = vmatprep.subr.bf16.mxu1 %v1785_v16  ;;  %v1812_v35 = vld [vmem:[#allocation6 + $0xc4] ss:$16 sps:$4 sm:$0xff]   ;;  %v1815_v36 = vld [vmem:[#allocation6 + $0xcc] ss:$16 sps:$4 sm:$0xff]   ;;  %v1810_v37 = vld [vmem:[#allocation6 + $0xc0] ss:$16 sps:$4 sm:$0xff]  }
  0x54   :  { %v1813_v38 = vld [vmem:[#allocation6 + $0xc8] ss:$16 sps:$4 sm:$0xff]   ;;  %v1818_v39 = vld [vmem:[#allocation6 + $0xe4] ss:$16 sps:$4 sm:$0xff]   ;;  %v1821_v40 = vld [vmem:[#allocation6 + $0xec] ss:$16 sps:$4 sm:$0xff]  }
  0x55   :  { %1014 = vmatpush1.bf16.msra.mxu0 %v1780_v17  ;;  %v1816_v41 = vld [vmem:[#allocation6 + $0xe0] ss:$16 sps:$4 sm:$0xff]   ;;  %v1819_v42 = vld [vmem:[#allocation6 + $0xe8] ss:$16 sps:$4 sm:$0xff]   ;;  %v1824_v43 = vld [vmem:[#allocation6 + $0x104] ss:$16 sps:$4 sm:$0xff]  }
  0x56   :  { %1096 = vmatpush1.bf16.msra.mxu1 %v1783_v18  ;;  %1015 = vmatprep.subr.bf16.mxu0 %v1788_v19  ;;  %v1827_v44 = vld [vmem:[#allocation6 + $0x10c] ss:$16 sps:$4 sm:$0xff]   ;;  %v1822_v45 = vld [vmem:[#allocation6 + $0x100] ss:$16 sps:$4 sm:$0xff]   ;;  %v1825_v46 = vld [vmem:[#allocation6 + $0x108] ss:$16 sps:$4 sm:$0xff]  }
  0x57   :  { %1097 = vmatprep.subr.bf16.mxu1 %v1791_v20  ;;  %v1830_v47 = vld [vmem:[#allocation6 + $0x124] ss:$16 sps:$4 sm:$0xff]   ;;  %v1828_v48 = vld [vmem:[#allocation6 + $0x120] ss:$16 sps:$4 sm:$0xff]   ;;  %v1833_v49 = vld [vmem:[#allocation6 + $0x12c] ss:$16 sps:$4 sm:$0xff]  }
  0x58   :  { %v1831_v50 = vld [vmem:[#allocation6 + $0x128] ss:$16 sps:$4 sm:$0xff]   ;;  %v1836_v51 = vld [vmem:[#allocation6 + $0x144] ss:$16 sps:$4 sm:$0xff]   ;;  %v1839_v52 = vld [vmem:[#allocation6 + $0x14c] ss:$16 sps:$4 sm:$0xff]  }
  0x59   :  { %1016 = vmatpush1.bf16.msra.mxu0 %v1786_v21  ;;  %v1834_v53 = vld [vmem:[#allocation6 + $0x140] ss:$16 sps:$4 sm:$0xff]   ;;  %v1837_v54 = vld [vmem:[#allocation6 + $0x148] ss:$16 sps:$4 sm:$0xff]   ;;  %v1842_v55 = vld [vmem:[#allocation6 + $0x164] ss:$16 sps:$4 sm:$0xff]  }
  0x5a   :  { %1098 = vmatpush1.bf16.msra.mxu1 %v1789_v22  ;;  %1017 = vmatprep.subr.bf16.mxu0 %v1794_v23  ;;  %v1845_v56 = vld [vmem:[#allocation6 + $0x16c] ss:$16 sps:$4 sm:$0xff]   ;;  %v1840_v57 = vld [vmem:[#allocation6 + $0x160] ss:$16 sps:$4 sm:$0xff]   ;;  %v1843_v58 = vld [vmem:[#allocation6 + $0x168] ss:$16 sps:$4 sm:$0xff]  }
  0x5b   :  { %1099 = vmatprep.subr.bf16.mxu1 %v1797_v24  ;;  %v1848_v59 = vld [vmem:[#allocation6 + $0x184] ss:$16 sps:$4 sm:$0xff]   ;;  %v1851_v60 = vld [vmem:[#allocation6 + $0x18c] ss:$16 sps:$4 sm:$0xff]   ;;  %v1846_v61 = vld [vmem:[#allocation6 + $0x180] ss:$16 sps:$4 sm:$0xff]  }
  0x5c   :  { %v1849_v62 = vld [vmem:[#allocation6 + $0x188] ss:$16 sps:$4 sm:$0xff]   ;;  %v1854_v63 = vld [vmem:[#allocation6 + $0x1a4] ss:$16 sps:$4 sm:$0xff]   ;;  %v1857_v0 = vld [vmem:[#allocation6 + $0x1ac] ss:$16 sps:$4 sm:$0xff]  }
  0x5d   :  { %1018 = vmatpush1.bf16.msra.mxu0 %v1792_v25  ;;  %v1852_v1 = vld [vmem:[#allocation6 + $0x1a0] ss:$16 sps:$4 sm:$0xff]   ;;  %v1855_v2 = vld [vmem:[#allocation6 + $0x1a8] ss:$16 sps:$4 sm:$0xff]   ;;  %v1860_v3 = vld [vmem:[#allocation6 + $0x1c4] ss:$16 sps:$4 sm:$0xff]  }
  0x5e   :  { %1100 = vmatpush1.bf16.msra.mxu1 %v1795_v26  ;;  %1019 = vmatprep.subr.bf16.mxu0 %v1800_v27  ;;  %v1863_v4 = vld [vmem:[#allocation6 + $0x1cc] ss:$16 sps:$4 sm:$0xff]   ;;  %v1858_v5 = vld [vmem:[#allocation6 + $0x1c0] ss:$16 sps:$4 sm:$0xff]   ;;  %v1861_v6 = vld [vmem:[#allocation6 + $0x1c8] ss:$16 sps:$4 sm:$0xff]  }
  0x5f   :  { %1101 = vmatprep.subr.bf16.mxu1 %v1803_v28  ;;  %v1866_v7 = vld [vmem:[#allocation6 + $0x1e4] ss:$16 sps:$4 sm:$0xff]   ;;  %v1869_v8 = vld [vmem:[#allocation6 + $0x1ec] ss:$16 sps:$4 sm:$0xff]   ;;  %v1864_v9 = vld [vmem:[#allocation6 + $0x1e0] ss:$16 sps:$4 sm:$0xff]  }
  0x60   :  { %v1867_v10 = vld [vmem:[#allocation6 + $0x1e8] ss:$16 sps:$4 sm:$0xff]   ;;  %v1872_v11 = vld [vmem:[#allocation6 + $0x204] ss:$16 sps:$4 sm:$0xff]   ;;  %v1875_v12 = vld [vmem:[#allocation6 + $0x20c] ss:$16 sps:$4 sm:$0xff]  }
  0x61   :  { %1020 = vmatpush1.bf16.msra.mxu0 %v1798_v29  ;;  %v2189_v14 = vshrl.u32 %v84_v13, 7  ;;  %v2195_v16 = vld [vmem:[%s2234_s2] sm:$0xf]  ;;  %v1932_v13 = vld [vmem:[#allocation6 + $0x344] ss:$16 sps:$4 sm:$0xff]  }
  0x62   :  { %1102 = vmatpush1.bf16.msra.mxu1 %v1801_v30  ;;  %1021 = vmatprep.subr.bf16.mxu0 %v1806_v31 }
  0x63   :  { %1103 = vmatprep.subr.bf16.mxu1 %v1809_v32  ;;  %v86_v15 = vsub.s32 0, %v2189_v14  ;;  %v90_v17 = vsub.s32 1, %v2189_v14  ;;  %v98_v18 = vsub.s32 3, %v2189_v14 }
  0x65   :  { %1022 = vmatpush1.bf16.msra.mxu0 %v1804_v33  ;;  %v87_v19 = vrot.slane %v2195_v16, %v86_v15  ;;  %v91_v20 = vrot.slane %v2195_v16, %v90_v17  ;;  %v99_v21 = vrot.slane %v2195_v16, %v98_v18 }
  0x66   :  { %1104 = vmatpush1.bf16.msra.mxu1 %v1807_v34  ;;  %1023 = vmatprep.subr.bf16.mxu0 %v1812_v35 }
  0x67   :  { %1105 = vmatprep.subr.bf16.mxu1 %v1815_v36 }
  0x69   :  { %1024 = vmatpush1.bf16.msra.mxu0 %v1810_v37  ;;  %v1870_v37 = vld [vmem:[#allocation6 + $0x200] ss:$16 sps:$4 sm:$0xff]  }
  0x6a   :  { %1106 = vmatpush1.bf16.msra.mxu1 %v1813_v38  ;;  %1025 = vmatprep.subr.bf16.mxu0 %v1818_v39  ;;  %v1873_v38 = vld [vmem:[#allocation6 + $0x208] ss:$16 sps:$4 sm:$0xff]  }
  0x6b   :  { %1107 = vmatprep.subr.bf16.mxu1 %v1821_v40  ;;  %v1878_v40 = vld [vmem:[#allocation6 + $0x224] ss:$16 sps:$4 sm:$0xff]  }
  0x6d   :  { %1026 = vmatpush1.bf16.msra.mxu0 %v1816_v41  ;;  %v1881_v41 = vld [vmem:[#allocation6 + $0x22c] ss:$16 sps:$4 sm:$0xff]  }
  0x6e   :  { %1108 = vmatpush1.bf16.msra.mxu1 %v1819_v42  ;;  %1027 = vmatprep.subr.bf16.mxu0 %v1824_v43  ;;  %v1876_v43 = vld [vmem:[#allocation6 + $0x220] ss:$16 sps:$4 sm:$0xff]  }
  0x6f   :  { %1109 = vmatprep.subr.bf16.mxu1 %v1827_v44  ;;  %v1879_v44 = vld [vmem:[#allocation6 + $0x228] ss:$16 sps:$4 sm:$0xff]  }
  0x71   :  { %1028 = vmatpush1.bf16.msra.mxu0 %v1822_v45  ;;  %v1884_v45 = vld [vmem:[#allocation6 + $0x244] ss:$16 sps:$4 sm:$0xff]  }
  0x72   :  { %1110 = vmatpush1.bf16.msra.mxu1 %v1825_v46  ;;  %1029 = vmatprep.subr.bf16.mxu0 %v1830_v47  ;;  %v1887_v46 = vld [vmem:[#allocation6 + $0x24c] ss:$16 sps:$4 sm:$0xff]   ;;  %v1882_v47 = vld [vmem:[#allocation6 + $0x240] ss:$16 sps:$4 sm:$0xff]  }
  0x73   :  { %1111 = vmatprep.subr.bf16.mxu1 %v1833_v49  ;;  %v1890_v49 = vld [vmem:[#allocation6 + $0x264] ss:$16 sps:$4 sm:$0xff]  }
  0x75   :  { %1030 = vmatpush1.bf16.msra.mxu0 %v1828_v48  ;;  %v1885_v48 = vld [vmem:[#allocation6 + $0x248] ss:$16 sps:$4 sm:$0xff]  }
  0x76   :  { %1112 = vmatpush1.bf16.msra.mxu1 %v1831_v50  ;;  %1031 = vmatprep.subr.bf16.mxu0 %v1836_v51  ;;  %v1893_v50 = vld [vmem:[#allocation6 + $0x26c] ss:$16 sps:$4 sm:$0xff]   ;;  %v1888_v51 = vld [vmem:[#allocation6 + $0x260] ss:$16 sps:$4 sm:$0xff]  }
  0x77   :  { %1113 = vmatprep.subr.bf16.mxu1 %v1839_v52  ;;  %v1891_v52 = vld [vmem:[#allocation6 + $0x268] ss:$16 sps:$4 sm:$0xff]  }
  0x79   :  { %1032 = vmatpush1.bf16.msra.mxu0 %v1834_v53  ;;  %v1896_v53 = vld [vmem:[#allocation6 + $0x284] ss:$16 sps:$4 sm:$0xff]  }
  0x7a   :  { %1114 = vmatpush1.bf16.msra.mxu1 %v1837_v54  ;;  %1033 = vmatprep.subr.bf16.mxu0 %v1842_v55  ;;  %v1899_v54 = vld [vmem:[#allocation6 + $0x28c] ss:$16 sps:$4 sm:$0xff]   ;;  %v1894_v55 = vld [vmem:[#allocation6 + $0x280] ss:$16 sps:$4 sm:$0xff]  }
  0x7b   :  { %1115 = vmatprep.subr.bf16.mxu1 %v1845_v56  ;;  %v1897_v56 = vld [vmem:[#allocation6 + $0x288] ss:$16 sps:$4 sm:$0xff]  }
  0x7d   :  { %1034 = vmatpush1.bf16.msra.mxu0 %v1840_v57  ;;  %v1902_v57 = vld [vmem:[#allocation6 + $0x2a4] ss:$16 sps:$4 sm:$0xff]  }
  0x7e   :  { %1116 = vmatpush1.bf16.msra.mxu1 %v1843_v58  ;;  %1035 = vmatprep.subr.bf16.mxu0 %v1848_v59  ;;  %v1905_v58 = vld [vmem:[#allocation6 + $0x2ac] ss:$16 sps:$4 sm:$0xff]   ;;  %v1900_v59 = vld [vmem:[#allocation6 + $0x2a0] ss:$16 sps:$4 sm:$0xff]  }
  0x7f   :  { %1117 = vmatprep.subr.bf16.mxu1 %v1851_v60  ;;  %v1903_v60 = vld [vmem:[#allocation6 + $0x2a8] ss:$16 sps:$4 sm:$0xff]  }
  0x81   :  { %1036 = vmatpush1.bf16.msra.mxu0 %v1846_v61  ;;  %v1908_v61 = vld [vmem:[#allocation6 + $0x2c4] ss:$16 sps:$4 sm:$0xff]  }
  0x82   :  { %1118 = vmatpush1.bf16.msra.mxu1 %v1849_v62  ;;  %1037 = vmatprep.subr.bf16.mxu0 %v1854_v63  ;;  %v1911_v62 = vld [vmem:[#allocation6 + $0x2cc] ss:$16 sps:$4 sm:$0xff]   ;;  %v1906_v63 = vld [vmem:[#allocation6 + $0x2c0] ss:$16 sps:$4 sm:$0xff]  }
  0x83   :  { %1119 = vmatprep.subr.bf16.mxu1 %v1857_v0  ;;  %v1909_v0 = vld [vmem:[#allocation6 + $0x2c8] ss:$16 sps:$4 sm:$0xff]  }
  0x85   :  { %1038 = vmatpush1.bf16.msra.mxu0 %v1852_v1  ;;  %v1914_v1 = vld [vmem:[#allocation6 + $0x2e4] ss:$16 sps:$4 sm:$0xff]  }
  0x86   :  { %1120 = vmatpush1.bf16.msra.mxu1 %v1855_v2  ;;  %1039 = vmatprep.subr.bf16.mxu0 %v1860_v3  ;;  %v1917_v2 = vld [vmem:[#allocation6 + $0x2ec] ss:$16 sps:$4 sm:$0xff]   ;;  %v1912_v3 = vld [vmem:[#allocation6 + $0x2e0] ss:$16 sps:$4 sm:$0xff]  }
  0x87   :  { %1121 = vmatprep.subr.bf16.mxu1 %v1863_v4  ;;  %v1915_v4 = vld [vmem:[#allocation6 + $0x2e8] ss:$16 sps:$4 sm:$0xff]  }
  0x89   :  { %1040 = vmatpush1.bf16.msra.mxu0 %v1858_v5  ;;  %v1920_v5 = vld [vmem:[#allocation6 + $0x304] ss:$16 sps:$4 sm:$0xff]  }
  0x8a   :  { %1122 = vmatpush1.bf16.msra.mxu1 %v1861_v6  ;;  %1041 = vmatprep.subr.bf16.mxu0 %v1866_v7  ;;  %v1923_v6 = vld [vmem:[#allocation6 + $0x30c] ss:$16 sps:$4 sm:$0xff]   ;;  %v1918_v7 = vld [vmem:[#allocation6 + $0x300] ss:$16 sps:$4 sm:$0xff]  }
  0x8b   :  { %1123 = vmatprep.subr.bf16.mxu1 %v1869_v8  ;;  %v1921_v8 = vld [vmem:[#allocation6 + $0x308] ss:$16 sps:$4 sm:$0xff]  }
  0x8d   :  { %1042 = vmatpush1.bf16.msra.mxu0 %v1864_v9  ;;  %v1926_v9 = vld [vmem:[#allocation6 + $0x324] ss:$16 sps:$4 sm:$0xff]  }
  0x8e   :  { %1124 = vmatpush1.bf16.msra.mxu1 %v1867_v10  ;;  %1052 = vmatprep.subr.bf16.mxu0 %v1872_v11  ;;  %v1929_v10 = vld [vmem:[#allocation6 + $0x32c] ss:$16 sps:$4 sm:$0xff]   ;;  %v1924_v11 = vld [vmem:[#allocation6 + $0x320] ss:$16 sps:$4 sm:$0xff]  }
  0x8f   :  { %1134 = vmatprep.subr.bf16.mxu1 %v1875_v12  ;;  %v1927_v12 = vld [vmem:[#allocation6 + $0x328] ss:$16 sps:$4 sm:$0xff]  }
 0x123   :  { %v165_v22 = vpop.f32.mrb[0].mxu0 }
 0x124   :  { %v166_v23 = vadd.f32 %v165_v22, %v87_v19  ;;  %v167_v24 = vpop.f32.mrb[1].mxu0  ;;  %v2208_v25 = vpop.f32.mrb[0].mxu1  ;;  %v1935_v19 = vld [vmem:[#allocation6 + $0x34c] ss:$16 sps:$4 sm:$0xff]   ;;  %v1938_v22 = vld [vmem:[#allocation6 + $0x364] ss:$16 sps:$4 sm:$0xff]  }
 0x125   :  { %v168_v26 = vadd.f32 %v167_v24, %v91_v20  ;;  %v169_v27 = vpop.f32.mrb[2].mxu0  ;;  %v208_v28 = vpop.f32.mrb[1].mxu1  ;;  %v1930_v20 = vld [vmem:[#allocation6 + $0x340] ss:$16 sps:$4 sm:$0xff]  }
 0x126   :  { %v213_v29 = vmax.f32 %v166_v23, 0.0  ;;  %v170_v30 = vpop.f32.mrb[3].mxu0  ;;  %v209_v31 = vadd.f32 %v208_v28, %v99_v21  ;;  %v210_v32 = vpop.f32.mrb[2].mxu1  ;;  %v1933_v21 = vld [vmem:[#allocation6 + $0x348] ss:$16 sps:$4 sm:$0xff]  }
 0x127   :  { %v214_v33 = vmax.f32 %v168_v26, 0.0  ;;  %v211_v34 = vpop.f32.mrb[3].mxu1  ;;  %v1941_v23 = vld [vmem:[#allocation6 + $0x36c] ss:$16 sps:$4 sm:$0xff]   ;;  %v1936_v24 = vld [vmem:[#allocation6 + $0x360] ss:$16 sps:$4 sm:$0xff]  }
 0x128   :  { %v216_v35 = vmax.f32 %v209_v31, 0.0  ;;  %v217_v39 = vpack.c.bf16 %v213_v29, %v213_v29  ;;  %v1939_v26 = vld [vmem:[#allocation6 + $0x368] ss:$16 sps:$4 sm:$0xff]   ;;  %v1944_v27 = vld [vmem:[#allocation6 + $0x384] ss:$16 sps:$4 sm:$0xff]   ;;  %v94_v31 = vsub.s32 2, %v2189_v14 }
 0x129   :  { %v218_v36 = vpack.c.bf16 %v214_v33, %v214_v33  ;;  %v1947_v28 = vld [vmem:[#allocation6 + $0x38c] ss:$16 sps:$4 sm:$0xff]   ;;  %v1942_v29 = vld [vmem:[#allocation6 + $0x380] ss:$16 sps:$4 sm:$0xff]   ;;  %v1945_v30 = vld [vmem:[#allocation6 + $0x388] ss:$16 sps:$4 sm:$0xff]  }
 0x12a   :  { %v220_v42 = vpack.c.bf16 %v216_v35, %v216_v35  ;;  %v1950_v32 = vld [vmem:[#allocation6 + $0x3a4] ss:$16 sps:$4 sm:$0xff]   ;;  %v1953_v33 = vld [vmem:[#allocation6 + $0x3ac] ss:$16 sps:$4 sm:$0xff]   ;;  %v1948_v34 = vld [vmem:[#allocation6 + $0x3a0] ss:$16 sps:$4 sm:$0xff]  }
 0x12b   :  { %1043 = vmatprep.mubr.bf16.mxu0 %v218_v36  ;;  %1125 = vmatprep.mubr.bf16.mxu1 %v218_v36  ;;  %v1951_v35 = vld [vmem:[#allocation6 + $0x3a8] ss:$16 sps:$4 sm:$0xff]   ;;  %v95_v36 = vrot.slane %v2195_v16, %v94_v31  ;;  %v1966_v16 = vld [vmem:[#allocation7 + $0x40] sm:$0xff]  }
 0x12c   :  { %1044 = vmatmul.mubr.bf16.vlgmr.msra.gmra.mrb[4].mxu0 %v217_v39  ;;  %1126 = vmatmul.mubr.bf16.vlgmr.msra.gmra.mrb[4].mxu1 %v217_v39  ;;  %v1954_v39 = vld [vmem:[#allocation6 + $0x3c0] ss:$16 sps:$4 sm:$0xff]  }
 0x12d   :  { %1053 = vmatpush1.bf16.msra.mxu0 %v1870_v37  ;;  %1135 = vmatpush1.bf16.msra.mxu1 %v1873_v38  ;;  %v1956_v37 = vld [vmem:[#allocation6 + $0x3c4] ss:$16 sps:$4 sm:$0xff]   ;;  %v1959_v38 = vld [vmem:[#allocation6 + $0x3cc] ss:$16 sps:$4 sm:$0xff]  }
 0x12e   :  { %1054 = vmatprep.subr.bf16.mxu0 %v1878_v40  ;;  %1136 = vmatprep.subr.bf16.mxu1 %v1881_v41  ;;  %v1957_v40 = vld [vmem:[#allocation6 + $0x3c8] ss:$16 sps:$4 sm:$0xff]   ;;  %v207_v41 = vadd.f32 %v2208_v25, %v95_v36 }
 0x12f   :  { %1084 = vmatprep.mubr.bf16.mxu0 %v220_v42  ;;  %1166 = vmatprep.mubr.bf16.mxu1 %v220_v42  ;;  %v1962_v42 = vld [vmem:[#allocation6 + $0x3e4] ss:$16 sps:$4 sm:$0xff]   ;;  %v1970_v25 = vld [vmem:[#allocation7 + $0x48] sm:$0xff]  }
 0x131   :  { %1055 = vmatpush1.bf16.msra.mxu0 %v1876_v43  ;;  %1137 = vmatpush1.bf16.msra.mxu1 %v1879_v44  ;;  %v1965_v43 = vld [vmem:[#allocation6 + $0x3ec] ss:$16 sps:$4 sm:$0xff]   ;;  %v1960_v44 = vld [vmem:[#allocation6 + $0x3e0] ss:$16 sps:$4 sm:$0xff]  }
 0x132   :  { %1056 = vmatprep.subr.bf16.mxu0 %v1884_v45  ;;  %1138 = vmatprep.subr.bf16.mxu1 %v1887_v46  ;;  %v1963_v45 = vld [vmem:[#allocation6 + $0x3e8] ss:$16 sps:$4 sm:$0xff]   ;;  %v215_v46 = vmax.f32 %v207_v41, 0.0 }
 0x135   :  { %1057 = vmatpush1.bf16.msra.mxu0 %v1882_v47  ;;  %1139 = vmatpush1.bf16.msra.mxu1 %v1885_v48  ;;  %v1967_v47 = vld [vmem:[#allocation7 + $0xc0] sm:$0xff]  }
 0x136   :  { %1058 = vmatprep.subr.bf16.mxu0 %v1890_v49  ;;  %1140 = vmatprep.subr.bf16.mxu1 %v1893_v50  ;;  %v1968_v48 = vld [vmem:[#allocation7] sm:$0xff]   ;;  %v219_v50 = vpack.c.bf16 %v215_v46, %v215_v46 }
 0x137   :  { %v1969_v49 = vld [vmem:[#allocation7 + $0x80] sm:$0xff]  }
 0x139   :  { %1059 = vmatpush1.bf16.msra.mxu0 %v1888_v51  ;;  %1141 = vmatpush1.bf16.msra.mxu1 %v1891_v52  ;;  %v1971_v51 = vld [vmem:[#allocation7 + $0xc8] sm:$0xff]  }
 0x13a   :  { %1060 = vmatprep.subr.bf16.mxu0 %v1896_v53  ;;  %1142 = vmatprep.subr.bf16.mxu1 %v1899_v54  ;;  %v1972_v52 = vld [vmem:[#allocation7 + $0x8] sm:$0xff]   ;;  %v1974_v54 = vld [vmem:[#allocation7 + $0x50] sm:$0xff]  }
 0x13b   :  { %v1973_v53 = vld [vmem:[#allocation7 + $0x88] sm:$0xff]  }
 0x13d   :  { %1061 = vmatpush1.bf16.msra.mxu0 %v1894_v55  ;;  %1143 = vmatpush1.bf16.msra.mxu1 %v1897_v56  ;;  %v1975_v55 = vld [vmem:[#allocation7 + $0xd0] sm:$0xff]  }
 0x13e   :  { %1062 = vmatprep.subr.bf16.mxu0 %v1902_v57  ;;  %1144 = vmatprep.subr.bf16.mxu1 %v1905_v58  ;;  %v1976_v56 = vld [vmem:[#allocation7 + $0x10] sm:$0xff]   ;;  %v1978_v58 = vld [vmem:[#allocation7 + $0x58] sm:$0xff]  }
 0x13f   :  { %v1977_v57 = vld [vmem:[#allocation7 + $0x90] sm:$0xff]  }
 0x141   :  { %1063 = vmatpush1.bf16.msra.mxu0 %v1900_v59  ;;  %1145 = vmatpush1.bf16.msra.mxu1 %v1903_v60  ;;  %v1979_v59 = vld [vmem:[#allocation7 + $0xd8] sm:$0xff]  }
 0x142   :  { %1064 = vmatprep.subr.bf16.mxu0 %v1908_v61  ;;  %1146 = vmatprep.subr.bf16.mxu1 %v1911_v62  ;;  %v1980_v60 = vld [vmem:[#allocation7 + $0x18] sm:$0xff]   ;;  %v1982_v62 = vld [vmem:[#allocation7 + $0x60] sm:$0xff]  }
 0x143   :  { %v1981_v61 = vld [vmem:[#allocation7 + $0x98] sm:$0xff]  }
 0x145   :  { %1065 = vmatpush1.bf16.msra.mxu0 %v1906_v63  ;;  %1147 = vmatpush1.bf16.msra.mxu1 %v1909_v0  ;;  %v1983_v63 = vld [vmem:[#allocation7 + $0xe0] sm:$0xff]  }
 0x146   :  { %1066 = vmatprep.subr.bf16.mxu0 %v1914_v1  ;;  %1148 = vmatprep.subr.bf16.mxu1 %v1917_v2  ;;  %v1984_v0 = vld [vmem:[#allocation7 + $0x20] sm:$0xff]   ;;  %v1986_v2 = vld [vmem:[#allocation7 + $0x68] sm:$0xff]  }
 0x147   :  { %v1985_v1 = vld [vmem:[#allocation7 + $0xa0] sm:$0xff]  }
 0x149   :  { %1067 = vmatpush1.bf16.msra.mxu0 %v1912_v3  ;;  %1149 = vmatpush1.bf16.msra.mxu1 %v1915_v4  ;;  %v1987_v3 = vld [vmem:[#allocation7 + $0xe8] sm:$0xff]  }
 0x14a   :  { %1068 = vmatprep.subr.bf16.mxu0 %v1920_v5  ;;  %1150 = vmatprep.subr.bf16.mxu1 %v1923_v6  ;;  %v1988_v4 = vld [vmem:[#allocation7 + $0x28] sm:$0xff]   ;;  %v1990_v6 = vld [vmem:[#allocation7 + $0x70] sm:$0xff]  }
 0x14b   :  { %v1989_v5 = vld [vmem:[#allocation7 + $0xa8] sm:$0xff]  }
 0x14d   :  { %1069 = vmatpush1.bf16.msra.mxu0 %v1918_v7  ;;  %1151 = vmatpush1.bf16.msra.mxu1 %v1921_v8  ;;  %v1991_v7 = vld [vmem:[#allocation7 + $0xf0] sm:$0xff]  }
 0x14e   :  { %1070 = vmatprep.subr.bf16.mxu0 %v1926_v9  ;;  %1152 = vmatprep.subr.bf16.mxu1 %v1929_v10  ;;  %v1992_v8 = vld [vmem:[#allocation7 + $0x30] sm:$0xff]   ;;  %v1994_v10 = vld [vmem:[#allocation7 + $0x78] sm:$0xff]  }
 0x14f   :  { %v1993_v9 = vld [vmem:[#allocation7 + $0xb0] sm:$0xff]  }
 0x151   :  { %1071 = vmatpush1.bf16.msra.mxu0 %v1924_v11  ;;  %1153 = vmatpush1.bf16.msra.mxu1 %v1927_v12  ;;  %v1995_v11 = vld [vmem:[#allocation7 + $0xf8] sm:$0xff]  }
 0x152   :  { %1072 = vmatprep.subr.bf16.mxu0 %v1932_v13  ;;  %1154 = vmatprep.subr.bf16.mxu1 %v1935_v19  ;;  %v1996_v12 = vld [vmem:[#allocation7 + $0x38] sm:$0xff]   ;;  %v349_v19 = vld [vmem:[%s2236_s4] sm:$0xf] }
 0x153   :  { %v1997_v13 = vld [vmem:[#allocation7 + $0xb8] sm:$0xff]  }
 0x155   :  { %1073 = vmatpush1.bf16.msra.mxu0 %v1930_v20  ;;  %1155 = vmatpush1.bf16.msra.mxu1 %v1933_v21  ;;  %v354_v20 = vrot.slane %v349_v19, %v86_v15  ;;  %v362_v21 = vrot.slane %v349_v19, %v94_v31 }
 0x156   :  { %1074 = vmatprep.subr.bf16.mxu0 %v1938_v22  ;;  %1156 = vmatprep.subr.bf16.mxu1 %v1941_v23  ;;  %v358_v22 = vrot.slane %v349_v19, %v90_v17  ;;  %v366_v23 = vrot.slane %v349_v19, %v98_v18 }
 0x159   :  { %1075 = vmatpush1.bf16.msra.mxu0 %v1936_v24  ;;  %1157 = vmatpush1.bf16.msra.mxu1 %v1939_v26 }
 0x15a   :  { %1076 = vmatprep.subr.bf16.mxu0 %v1944_v27  ;;  %1158 = vmatprep.subr.bf16.mxu1 %v1947_v28 }
 0x15d   :  { %1077 = vmatpush1.bf16.msra.mxu0 %v1942_v29  ;;  %1159 = vmatpush1.bf16.msra.mxu1 %v1945_v30 }
 0x15e   :  { %1078 = vmatprep.subr.bf16.mxu0 %v1950_v32  ;;  %1160 = vmatprep.subr.bf16.mxu1 %v1953_v33 }
 0x161   :  { %1079 = vmatpush1.bf16.msra.mxu0 %v1948_v34  ;;  %1161 = vmatpush1.bf16.msra.mxu1 %v1951_v35 }
 0x162   :  { %1080 = vmatprep.subr.bf16.mxu0 %v1956_v37  ;;  %1162 = vmatprep.subr.bf16.mxu1 %v1959_v38 }
 0x165   :  { %1081 = vmatpush1.bf16.msra.mxu0 %v1954_v39  ;;  %1163 = vmatpush1.bf16.msra.mxu1 %v1957_v40 }
 0x166   :  { %1082 = vmatprep.subr.bf16.mxu0 %v1962_v42  ;;  %1164 = vmatprep.subr.bf16.mxu1 %v1965_v43 }
 0x169   :  { %1083 = vmatpush1.bf16.msra.mxu0 %v1960_v44  ;;  %1165 = vmatpush1.bf16.msra.mxu1 %v1963_v45 }
 0x16a   :  { %1705 = vmatprep.subr.bf16.mxu0 %v1966_v16  ;;  %1727 = vmatprep.subr.bf16.mxu1 %v1967_v47 }
 0x16c   :  { %1085 = vmatmul.mubr.bf16.vlgmr.msra.gmra.mrb[4].mxu0 %v219_v50  ;;  %1167 = vmatmul.mubr.bf16.vlgmr.msra.gmra.mrb[4].mxu1 %v219_v50 }
 0x16d   :  { %1706 = vmatpush3.bf16.msra.mxu0 %v1968_v48  ;;  %1728 = vmatpush3.bf16.msra.mxu1 %v1969_v49  ;;  %v1704_v48 = vld [vmem:[%s2238_s6] ss:$0 sm:$0xff] }
 0x16e   :  { %1707 = vmatprep.subr.bf16.mxu0 %v1970_v25  ;;  %1729 = vmatprep.subr.bf16.mxu1 %v1971_v51 }
 0x171   :  { %1708 = vmatpush3.bf16.msra.mxu0 %v1972_v52  ;;  %1730 = vmatpush3.bf16.msra.mxu1 %v1973_v53 }
 0x172   :  { %1709 = vmatprep.subr.bf16.mxu0 %v1974_v54  ;;  %1731 = vmatprep.subr.bf16.mxu1 %v1975_v55 }
 0x175   :  { %1710 = vmatpush3.bf16.msra.mxu0 %v1976_v56  ;;  %1732 = vmatpush3.bf16.msra.mxu1 %v1977_v57 }
 0x176   :  { %1711 = vmatprep.subr.bf16.mxu0 %v1978_v58  ;;  %1733 = vmatprep.subr.bf16.mxu1 %v1979_v59 }
 0x179   :  { %1712 = vmatpush3.bf16.msra.mxu0 %v1980_v60  ;;  %1734 = vmatpush3.bf16.msra.mxu1 %v1981_v61 }
 0x17a   :  { %1713 = vmatprep.subr.bf16.mxu0 %v1982_v62  ;;  %1735 = vmatprep.subr.bf16.mxu1 %v1983_v63 }
 0x17d   :  { %1714 = vmatpush3.bf16.msra.mxu0 %v1984_v0  ;;  %1736 = vmatpush3.bf16.msra.mxu1 %v1985_v1 }
 0x17e   :  { %1715 = vmatprep.subr.bf16.mxu0 %v1986_v2  ;;  %1737 = vmatprep.subr.bf16.mxu1 %v1987_v3 }
 0x181   :  { %1716 = vmatpush3.bf16.msra.mxu0 %v1988_v4  ;;  %1738 = vmatpush3.bf16.msra.mxu1 %v1989_v5 }
 0x182   :  { %1717 = vmatprep.subr.bf16.mxu0 %v1990_v6  ;;  %1739 = vmatprep.subr.bf16.mxu1 %v1991_v7 }
 0x185   :  { %1718 = vmatpush3.bf16.msra.mxu0 %v1992_v8  ;;  %1740 = vmatpush3.bf16.msra.mxu1 %v1993_v9 }
 0x186   :  { %1719 = vmatprep.subr.bf16.mxu0 %v1994_v10  ;;  %1741 = vmatprep.subr.bf16.mxu1 %v1995_v11 }
 0x189   :  { %1720 = vmatpush3.bf16.msra.mxu0 %v1996_v12  ;;  %1742 = vmatpush3.bf16.msra.mxu1 %v1997_v13 }
 0x23f   :  { %v1086_v24 = vpop.f32.mrb[4].mxu0  ;;  %v1168_v26 = vpop.f32.mrb[4].mxu1 }
 0x240   :  { %v1749_v27 = vadd.f32 %v1086_v24, %v354_v20  ;;  %v1751_v28 = vadd.f32 %v1168_v26, %v362_v21  ;;  %v1088_v29 = vpop.f32.mrb[5].mxu0  ;;  %v1170_v30 = vpop.f32.mrb[5].mxu1 }
 0x241   :  { %v1750_v32 = vadd.f32 %v1088_v29, %v358_v22  ;;  %v1752_v33 = vadd.f32 %v1170_v30, %v366_v23  ;;  %v1090_v34 = vpop.f32.mrb[6].mxu0  ;;  %v1172_v35 = vpop.f32.mrb[6].mxu1 }
 0x242   :  { %v1175_v15 = vmax.f32 %v1749_v27, 0.0  ;;  %v1177_v36 = vmax.f32 %v1751_v28, 0.0  ;;  %v1091_v37 = vpop.f32.mrb[7].mxu0  ;;  %v1173_v31 = vpop.f32.mrb[7].mxu1 }
 0x243   :  { %v1176_v38 = vmax.f32 %v1750_v32, 0.0  ;;  %v1178_v39 = vmax.f32 %v1752_v33, 0.0 }
 0x244   :  { %v1179_v14 = vpack.c.bf16 %v1175_v15, %v1175_v15  ;;  %v1181_v18 = vpack.c.bf16 %v1177_v36, %v1177_v36 }
 0x245   :  { %v1180_v17 = vpack.c.bf16 %v1176_v38, %v1176_v38  ;;  %v1182_v40 = vpack.c.bf16 %v1178_v39, %v1178_v39 }
 0x247   :  { %1471 = vmatprep.mubr.bf16.mxu0 %v1180_v17  ;;  %1511 = vmatprep.mubr.bf16.mxu1 %v1182_v40 }
 0x248   :  { %1472 = vmatmul.mubr.bf16.vlgmr.msra.gmra.mrb[8].mxu0 %v1179_v14  ;;  %1512 = vmatmul.mubr.bf16.vlgmr.msra.gmra.mrb[8].mxu1 %v1181_v18 }
 0x31b   :  { %v1721_v41 = vpop.f32.mrb[8].mxu0  ;;  %v1743_v42 = vpop.f32.mrb[8].mxu1 }
 0x31c   :  { %v1722_v43 = vpop.f32.mrb[9].mxu0  ;;  %v1744_v44 = vpop.f32.mrb[9].mxu1 }
 0x31d   :  { %v1723_v45 = vadd.f32 %v1722_v43, %v1721_v41  ;;  %v1745_v46 = vadd.f32 %v1744_v44, %v1743_v42  ;;  %v1724_v16 = vpop.f32.mrb[10].mxu0  ;;  %v1746_v47 = vpop.f32.mrb[10].mxu1 }
 0x31e   :  { %v1725_v49 = vpop.f32.mrb[11].mxu0  ;;  %v1747_v50 = vpop.f32.mrb[11].mxu1 }
 0x31f   :  { %v1514_v25 = vadd.f32 %v1745_v46, %v1723_v45 }
 0x321   :  { %v1526_v51 = vadd.f32 %v1704_v48, %v1514_v25 }
 0x323   :  { %1528 = vst.msk [vmem:[%s2239_s7] sm:$0xff] %vm1527_vm2, %v1526_v51 }
 0x324   :  { %1533 = vsyncpa [#allocation3], 1 }
 0x325   :  { %1534 = vsyncpa [#allocation5], 1 }
 0x326   :  { %1535 = vsyncpa [#allocation8], 1 }

</bundles_post_ra>
